<compile_context>
chip_gen: v7x
topology: tpu7x:2x2x1
jax: 0.10.0
libtpu: 0.0.40
codegen_flags: <defaults>
</compile_context>

<pallas_src>
import functools

import jax
import jax.numpy as jnp
from jax.experimental import pallas as pl
from jax.experimental.pallas import tpu as pltpu

BN_EPS = 1e-5


# --------------------------------------------------------------------------- #
# Pallas kernels
# --------------------------------------------------------------------------- #
def _phase1_kernel(f_ref, w_ref, ymax_ref, psum_ref, psq_ref, *, num_k):
    """Per M-tile: fused grouped 1x1 conv, raw max over k, partial BN stats.

    f_ref   : (k, 2C, tm)   gathered [x_i ; x_j] channels-on-sublane, pos-on-lane
    w_ref   : (Cout, 2C)    fused weight [ (W_i - W_d)^T | W_d^T ]
    ymax_ref: (Cout, tm)    max over k of the bias-free conv output (lane-dense)
    psum_ref, psq_ref: (1, Cout, 1) per-tile sum / sum-of-squares of conv output
    """
    w = w_ref[...]

    y = jnp.dot(w, f_ref[0], preferred_element_type=jnp.float32)      # (Cout, tm)
    ymax = y
    ssum = jnp.sum(y, axis=1, keepdims=True)                          # (Cout, 1)
    ssq = jnp.sum(y * y, axis=1, keepdims=True)
    for kk in range(1, num_k):                                        # k small: unrolled
        y = jnp.dot(w, f_ref[kk], preferred_element_type=jnp.float32)
        ymax = jnp.maximum(ymax, y)
        ssum = ssum + jnp.sum(y, axis=1, keepdims=True)
        ssq = ssq + jnp.sum(y * y, axis=1, keepdims=True)

    ymax_ref[...] = ymax
    psum_ref[0] = ssum
    psq_ref[0] = ssq


def _phase2_kernel(ymax_ref, psum_ref, psq_ref, o_ref, *, total_positions):
    """Combine partial BN stats, normalize the per-vertex maxima, ReLU.

    Exact: per-channel BN is a positive-scale affine (monotone) and ReLU is
    monotone, so both commute with the max over k taken in phase 1.  The conv
    bias cancels against the BN mean and was never added.
    """
    inv_p = 1.0 / float(total_positions)
    s = jnp.sum(psum_ref[...], axis=0)                                # (Cout, 1)
    sq = jnp.sum(psq_ref[...], axis=0)                                # (Cout, 1)
    mean = s * inv_p
    var = jnp.maximum(sq * inv_p - mean * mean, 0.0)                  # biased var
    scale = jax.lax.rsqrt(var + BN_EPS)
    y = (ymax_ref[...] - mean) * scale
    o_ref[...] = jnp.maximum(y, 0.0)


# --------------------------------------------------------------------------- #
# Host-side helpers (glue)
# --------------------------------------------------------------------------- #
def _torch_view(x):
    """Exact mirror of the torch helper's buffer reinterpretation for 2-D x:
    unsqueeze(0).unsqueeze(-1).transpose(2,1).contiguous().view(N, -1)."""
    n, c = x.shape
    return jnp.transpose(x).reshape(n, c)


def _block_diag_weight(w_grouped, c2, cout, groups):
    """Expand the grouped Conv2d weight (Cout, 2C//groups) to a block-diagonal
    (2C, Cout) matrix so the grouped 1x1 conv becomes a plain matmul."""
    cig = c2 // groups
    cog = cout // groups
    w_full = jnp.zeros((c2, cout), jnp.float32)
    for g in range(groups):
        blk = w_grouped[g * cog:(g + 1) * cog, :]                     # (cog, cig)
        w_full = w_full.at[g * cig:(g + 1) * cig, g * cog:(g + 1) * cog].set(blk.T)
    return w_full


def _pick_block_m(m, k, c2, cout, itemsize):
    """Largest M-tile (multiple of 128, dividing M) that stays well under the
    smallest default scoped VMEM (16 MiB on v5e); falls back to one full block."""
    budget = 8 * 1024 * 1024
    for cand in (1024, 512, 256, 128):
        if m % cand:
            continue
        need = 2 * k * c2 * cand * itemsize + 4 * cout * cand * 4    # dbl-buffered
        if need <= budget:
            return cand
    return m


# --------------------------------------------------------------------------- #
# Forward pass
# --------------------------------------------------------------------------- #
def edge_conv2d(x, edge_index, w_grouped, bias, *, groups=4, block_m=None,
                compute_dtype=jnp.float32):
    """EdgeConv2d forward (training-mode BatchNorm statistics).

    x          : (N, C) float32
    edge_index : (2, M, k) int32
    w_grouped  : (Cout, 2C//groups) float32   Conv2d weight with 1x1 squeezed
    bias       : (Cout,) float32  (dropped: cancels exactly under train-mode BN)
    returns    : (1, Cout, M, 1) float32
    """
    del bias
    n, c = x.shape
    m, k = int(edge_index.shape[1]), int(edge_index.shape[2])
    cout = int(w_grouped.shape[0])
    c2 = 2 * c
    total_p = m * k

    # --- gather both endpoints once, stack channels to 2C (glue) -------------
    v = _torch_view(x)
    gi = jnp.take(v, edge_index[1].reshape(-1), axis=0).reshape(m, k, c)   # x_i
    gj = jnp.take(v, edge_index[0].reshape(-1), axis=0).reshape(m, k, c)   # x_j
    feats = jnp.concatenate([gi, gj], axis=-1)            # (M, k, 2C)
    feats = jnp.transpose(feats, (1, 2, 0))               # (k, 2C, M)  lane-dense
    feats = feats.astype(compute_dtype)

    # --- fused conv weight:  y = x_i @ (W_i - W_d) + x_j @ W_d ----------------
    w_full = _block_diag_weight(w_grouped.astype(jnp.float32), c2, cout, groups)
    w_i, w_d = w_full[:c, :], w_full[c:, :]
    w_fused = jnp.concatenate([(w_i - w_d).T, w_d.T], axis=1)          # (Cout, 2C)
    w_fused = w_fused.astype(compute_dtype)

    # --- tiling over M ---------------------------------------------------------
    if block_m is None:
        block_m = _pick_block_m(m, k, c2, cout, jnp.dtype(compute_dtype).itemsize)
    assert m % block_m == 0, (m, block_m)
    grid_m = m // block_m

    # --- phase 1: conv + max over k + partial BN stats -------------------------
    ymax_raw, psum, psq = pl.pallas_call(
        functools.partial(_phase1_kernel, num_k=k),
        grid=(grid_m,),
        in_specs=[
            pl.BlockSpec((k, c2, block_m), lambda i: (0, 0, i)),
            pl.BlockSpec((cout, c2), lambda i: (0, 0)),
        ],
        out_specs=(
            pl.BlockSpec((cout, block_m), lambda i: (0, i)),
            pl.BlockSpec((1, cout, 1), lambda i: (i, 0, 0)),
            pl.BlockSpec((1, cout, 1), lambda i: (i, 0, 0)),
        ),
        out_shape=(
            jax.ShapeDtypeStruct((cout, m), jnp.float32),
            jax.ShapeDtypeStruct((grid_m, cout, 1), jnp.float32),
            jax.ShapeDtypeStruct((grid_m, cout, 1), jnp.float32),
        ),
        compiler_params=pltpu.CompilerParams(dimension_semantics=("parallel",)),
    )(feats, w_fused)

    # --- phase 2: BatchNorm (global batch stats) + ReLU ------------------------
    out_cm = pl.pallas_call(
        functools.partial(_phase2_kernel, total_positions=total_p),
        grid=(grid_m,),
        in_specs=[
            pl.BlockSpec((cout, block_m), lambda i: (0, i)),
            pl.BlockSpec((grid_m, cout, 1), lambda i: (0, 0, 0)),
            pl.BlockSpec((grid_m, cout, 1), lambda i: (0, 0, 0)),
        ],
        out_specs=pl.BlockSpec((cout, block_m), lambda i: (0, i)),
        out_shape=jax.ShapeDtypeStruct((cout, m), jnp.float32),
        compiler_params=pltpu.CompilerParams(dimension_semantics=("parallel",)),
    )(ymax_raw, psum, psq)

    # PyTorch NCHW output: (1, Cout, M, 1)
    return out_cm[None, :, :, None]


# --------------------------------------------------------------------------- #
# Pure-JAX reference (mirrors the torch module) and demo
# --------------------------------------------------------------------------- #
def _reference(x, edge_index, w_grouped, bias, groups):
    n, c = x.shape
    m, k = edge_index.shape[1], edge_index.shape[2]
    cout = w_grouped.shape[0]
    v = _torch_view(x)
    xi = jnp.take(v, edge_index[1].reshape(-1), axis=0)               # (M*k, C)
    xj = jnp.take(v, edge_index[0].reshape(-1), axis=0)
    w_full = _block_diag_weight(w_grouped, 2 * c, cout, groups)
    y = jnp.concatenate([xi, xj - xi], axis=1) @ w_full + bias        # (M*k, Cout)
    mean = jnp.mean(y, axis=0, keepdims=True)
    var = jnp.mean((y - mean) ** 2, axis=0, keepdims=True)
    y = jnp.maximum((y - mean) * jax.lax.rsqrt(var + BN_EPS), 0.0)
    y = jnp.max(y.reshape(m, k, cout), axis=1)                        # (M, Cout)
    return jnp.transpose(y)[None, :, :, None]


if __name__ == "__main__":
    key = jax.random.PRNGKey(0)
    kx, ke, kw, kb = jax.random.split(key, 4)

    # in_channels=4 (so 2C=8 is divisible by groups=4), out_channels=8
    N, C, M, K, COUT, GROUPS = 32, 4, 256, 8, 8, 4

    x = jax.random.normal(kx, (N, C), dtype=jnp.float32)
    edge_index = jax.random.randint(ke, (2, M, K), 0, N, dtype=jnp.int32)
    w_grouped = 0.1 * jax.random.normal(kw, (COUT, 2 * C // GROUPS), dtype=jnp.float32)
    bias = 0.1 * jax.random.normal(kb, (COUT,), dtype=jnp.float32)

    fwd = jax.jit(functools.partial(edge_conv2d, groups=GROUPS, block_m=128))
    out = jax.block_until_ready(fwd(x, edge_index, w_grouped, bias))

    assert out.shape == (1, COUT, M, 1), out.shape
    assert out.dtype == jnp.float32

    ref = jax.block_until_ready(_reference(x, edge_index, w_grouped, bias, GROUPS))
    max_err = float(jnp.max(jnp.abs(out - ref)))
    assert max_err < 2e-3, max_err

    print("KERNEL_OK")
</pallas_src>

<mosaic_0001>
module attributes {stable_mosaic.version = 11 : i64} {
  func.func @_phase2_kernel(%arg0: i32, %arg1: memref<8x128xf32, #tpu.memory_space<vmem>>, %arg2: memref<2x8x1xf32, #tpu.memory_space<vmem>>, %arg3: memref<2x8x1xf32, #tpu.memory_space<vmem>>, %arg4: memref<8x128xf32, #tpu.memory_space<vmem>>) attributes {dimension_semantics = [#tpu.dimension_semantics<parallel>], iteration_bounds = array<i64: 2>, scalar_prefetch = 0 : i64, scratch_operands = 0 : i64, tpu.core_type = #tpu.core_type<tc>, window_params = [{transform_indices = @transform_0, window_bounds = array<i64: 8, 128>}, {pipeline_mode = #tpu.pipeline_mode<synchronous>, transform_indices = @transform_1, window_bounds = array<i64: 2, 8, 1>}, {pipeline_mode = #tpu.pipeline_mode<synchronous>, transform_indices = @transform_2, window_bounds = array<i64: 2, 8, 1>}, {transform_indices = @transform_3, window_bounds = array<i64: 8, 128>}]} {
    %c0 = arith.constant 0 : index
    %c0_0 = arith.constant 0 : index
    %c0_1 = arith.constant 0 : index
    %0 = vector.load %arg2[%c0, %c0_0, %c0_1] : memref<2x8x1xf32, #tpu.memory_space<vmem>>, vector<2x8x1xf32>
    %cst = arith.constant dense<0.000000e+00> : vector<8x1xf32>
    %1 = vector.multi_reduction <add>, %0, %cst [0] : vector<2x8x1xf32> to vector<8x1xf32>
    %c0_2 = arith.constant 0 : index
    %c0_3 = arith.constant 0 : index
    %c0_4 = arith.constant 0 : index
    %2 = vector.load %arg3[%c0_2, %c0_3, %c0_4] : memref<2x8x1xf32, #tpu.memory_space<vmem>>, vector<2x8x1xf32>
    %cst_5 = arith.constant dense<0.000000e+00> : vector<8x1xf32>
    %3 = vector.multi_reduction <add>, %2, %cst_5 [0] : vector<2x8x1xf32> to vector<8x1xf32>
    %cst_6 = arith.constant 4.8828125E-4 : f32
    %4 = vector.broadcast %cst_6 : f32 to vector<8x1xf32>
    %5 = arith.mulf %1, %4 : vector<8x1xf32>
    %cst_7 = arith.constant 4.8828125E-4 : f32
    %6 = vector.broadcast %cst_7 : f32 to vector<8x1xf32>
    %7 = arith.mulf %3, %6 : vector<8x1xf32>
    %8 = arith.mulf %5, %5 : vector<8x1xf32>
    %9 = arith.subf %7, %8 : vector<8x1xf32>
    %cst_8 = arith.constant 0.000000e+00 : f32
    %10 = vector.broadcast %cst_8 : f32 to vector<8x1xf32>
    %11 = arith.maximumf %9, %10 : vector<8x1xf32>
    %cst_9 = arith.constant 9.99999974E-6 : f32
    %12 = vector.broadcast %cst_9 : f32 to vector<8x1xf32>
    %13 = arith.addf %11, %12 : vector<8x1xf32>
    %14 = math.rsqrt %13 : vector<8x1xf32>
    %c0_10 = arith.constant 0 : index
    %c0_11 = arith.constant 0 : index
    %15 = vector.load %arg1[%c0_10, %c0_11] : memref<8x128xf32, #tpu.memory_space<vmem>>, vector<8x128xf32>
    %16 = vector.broadcast %5 : vector<8x1xf32> to vector<8x128xf32>
    %17 = arith.subf %15, %16 : vector<8x128xf32>
    %18 = vector.broadcast %14 : vector<8x1xf32> to vector<8x128xf32>
    %19 = arith.mulf %17, %18 : vector<8x128xf32>
    %cst_12 = arith.constant 0.000000e+00 : f32
    %20 = vector.broadcast %cst_12 : f32 to vector<8x128xf32>
    %21 = arith.maximumf %19, %20 : vector<8x128xf32>
    %c0_13 = arith.constant 0 : index
    %c0_14 = arith.constant 0 : index
    %22 = vector.load %arg4[%c0_13, %c0_14] : memref<8x128xf32, #tpu.memory_space<vmem>>, vector<8x128xf32>
    tpu.vector_store %arg4[%c0_13, %c0_14], %21 {strides = array<i32>} : memref<8x128xf32, #tpu.memory_space<vmem>>, vector<8x128xf32>,
    return
  }
  func.func @transform_0(%arg0: i32) -> (i32, i32) {
    %c0_i32 = arith.constant 0 : i32
    %c0_i32_0 = arith.constant 0 : i32
    return %c0_i32, %arg0 : i32, i32
  }
  func.func @transform_1(%arg0: i32) -> (i32, i32, i32) {
    %c0_i32 = arith.constant 0 : i32
    %c0_i32_0 = arith.constant 0 : i32
    %c0_i32_1 = arith.constant 0 : i32
    %c0_i32_2 = arith.constant 0 : i32
    return %c0_i32, %c0_i32_0, %c0_i32_1 : i32, i32, i32
  }
  func.func @transform_2(%arg0: i32) -> (i32, i32, i32) {
    %c0_i32 = arith.constant 0 : i32
    %c0_i32_0 = arith.constant 0 : i32
    %c0_i32_1 = arith.constant 0 : i32
    %c0_i32_2 = arith.constant 0 : i32
    return %c0_i32, %c0_i32_0, %c0_i32_1 : i32, i32, i32
  }
  func.func @transform_3(%arg0: i32) -> (i32, i32) {
    %c0_i32 = arith.constant 0 : i32
    %c0_i32_0 = arith.constant 0 : i32
    return %c0_i32, %arg0 : i32, i32
  }
}

module attributes {stable_mosaic.version = 11 : i64} {
  func.func @_phase1_kernel(%arg0: i32, %arg1: memref<8x8x128xf32, #tpu.memory_space<vmem>>, %arg2: memref<8x8xf32, #tpu.memory_space<vmem>>, %arg3: memref<8x128xf32, #tpu.memory_space<vmem>>, %arg4: memref<1x8x1xf32, #tpu.memory_space<vmem>>, %arg5: memref<1x8x1xf32, #tpu.memory_space<vmem>>) attributes {dimension_semantics = [#tpu.dimension_semantics<parallel>], iteration_bounds = array<i64: 2>, scalar_prefetch = 0 : i64, scratch_operands = 0 : i64, tpu.core_type = #tpu.core_type<tc>, window_params = [{transform_indices = @transform_0, window_bounds = array<i64: 8, 8, 128>}, {pipeline_mode = #tpu.pipeline_mode<synchronous>, transform_indices = @transform_1, window_bounds = array<i64: 8, 8>}, {transform_indices = @transform_2, window_bounds = array<i64: 8, 128>}, {transform_indices = @transform_3, window_bounds = array<i64: 1, 8, 1>}, {transform_indices = @transform_4, window_bounds = array<i64: 1, 8, 1>}]} {
    %c0 = arith.constant 0 : index
    %c0_0 = arith.constant 0 : index
    %0 = vector.load %arg2[%c0, %c0_0] : memref<8x8xf32, #tpu.memory_space<vmem>>, vector<8x8xf32>
    %c0_1 = arith.constant 0 : index
    %c0_2 = arith.constant 0 : index
    %c0_3 = arith.constant 0 : index
    %1 = vector.load %arg1[%c0_1, %c0_2, %c0_3] : memref<8x8x128xf32, #tpu.memory_space<vmem>>, vector<1x8x128xf32>
    %2 = vector.shape_cast %1 : vector<1x8x128xf32> to vector<8x128xf32>
    %cst = arith.constant dense<0.000000e+00> : vector<8x128xf32>
    %3 = tpu.matmul %0, %2, %cst {dimension_numbers = #tpu.dot_dimension_numbers<[1], [0], [0], [1], [0, 0, 1, 1], [], []>} : vector<8x8xf32>, vector<8x128xf32>, vector<8x128xf32> -> vector<8x128xf32>
    %cst_4 = arith.constant dense<0.000000e+00> : vector<8xf32>
    %4 = vector.multi_reduction <add>, %3, %cst_4 [1] : vector<8x128xf32> to vector<8xf32>
    %5 = vector.shape_cast %4 : vector<8xf32> to vector<8x1xf32>
    %6 = arith.mulf %3, %3 : vector<8x128xf32>
    %cst_5 = arith.constant dense<0.000000e+00> : vector<8xf32>
    %7 = vector.multi_reduction <add>, %6, %cst_5 [1] : vector<8x128xf32> to vector<8xf32>
    %8 = vector.shape_cast %7 : vector<8xf32> to vector<8x1xf32>
    %c1 = arith.constant 1 : index
    %c0_6 = arith.constant 0 : index
    %c0_7 = arith.constant 0 : index
    %9 = vector.load %arg1[%c1, %c0_6, %c0_7] : memref<8x8x128xf32, #tpu.memory_space<vmem>>, vector<1x8x128xf32>
    %10 = vector.shape_cast %9 : vector<1x8x128xf32> to vector<8x128xf32>
    %cst_8 = arith.constant dense<0.000000e+00> : vector<8x128xf32>
    %11 = tpu.matmul %0, %10, %cst_8 {dimension_numbers = #tpu.dot_dimension_numbers<[1], [0], [0], [1], [0, 0, 1, 1], [], []>} : vector<8x8xf32>, vector<8x128xf32>, vector<8x128xf32> -> vector<8x128xf32>
    %12 = arith.maximumf %3, %11 : vector<8x128xf32>
    %cst_9 = arith.constant dense<0.000000e+00> : vector<8xf32>
    %13 = vector.multi_reduction <add>, %11, %cst_9 [1] : vector<8x128xf32> to vector<8xf32>
    %14 = vector.shape_cast %13 : vector<8xf32> to vector<8x1xf32>
    %15 = arith.addf %5, %14 : vector<8x1xf32>
    %16 = arith.mulf %11, %11 : vector<8x128xf32>
    %cst_10 = arith.constant dense<0.000000e+00> : vector<8xf32>
    %17 = vector.multi_reduction <add>, %16, %cst_10 [1] : vector<8x128xf32> to vector<8xf32>
    %18 = vector.shape_cast %17 : vector<8xf32> to vector<8x1xf32>
    %19 = arith.addf %8, %18 : vector<8x1xf32>
    %c2 = arith.constant 2 : index
    %c0_11 = arith.constant 0 : index
    %c0_12 = arith.constant 0 : index
    %20 = vector.load %arg1[%c2, %c0_11, %c0_12] : memref<8x8x128xf32, #tpu.memory_space<vmem>>, vector<1x8x128xf32>
    %21 = vector.shape_cast %20 : vector<1x8x128xf32> to vector<8x128xf32>
    %cst_13 = arith.constant dense<0.000000e+00> : vector<8x128xf32>
    %22 = tpu.matmul %0, %21, %cst_13 {dimension_numbers = #tpu.dot_dimension_numbers<[1], [0], [0], [1], [0, 0, 1, 1], [], []>} : vector<8x8xf32>, vector<8x128xf32>, vector<8x128xf32> -> vector<8x128xf32>
    %23 = arith.maximumf %12, %22 : vector<8x128xf32>
    %cst_14 = arith.constant dense<0.000000e+00> : vector<8xf32>
    %24 = vector.multi_reduction <add>, %22, %cst_14 [1] : vector<8x128xf32> to vector<8xf32>
    %25 = vector.shape_cast %24 : vector<8xf32> to vector<8x1xf32>
    %26 = arith.addf %15, %25 : vector<8x1xf32>
    %27 = arith.mulf %22, %22 : vector<8x128xf32>
    %cst_15 = arith.constant dense<0.000000e+00> : vector<8xf32>
    %28 = vector.multi_reduction <add>, %27, %cst_15 [1] : vector<8x128xf32> to vector<8xf32>
    %29 = vector.shape_cast %28 : vector<8xf32> to vector<8x1xf32>
    %30 = arith.addf %19, %29 : vector<8x1xf32>
    %c3 = arith.constant 3 : index
    %c0_16 = arith.constant 0 : index
    %c0_17 = arith.constant 0 : index
    %31 = vector.load %arg1[%c3, %c0_16, %c0_17] : memref<8x8x128xf32, #tpu.memory_space<vmem>>, vector<1x8x128xf32>
    %32 = vector.shape_cast %31 : vector<1x8x128xf32> to vector<8x128xf32>
    %cst_18 = arith.constant dense<0.000000e+00> : vector<8x128xf32>
    %33 = tpu.matmul %0, %32, %cst_18 {dimension_numbers = #tpu.dot_dimension_numbers<[1], [0], [0], [1], [0, 0, 1, 1], [], []>} : vector<8x8xf32>, vector<8x128xf32>, vector<8x128xf32> -> vector<8x128xf32>
    %34 = arith.maximumf %23, %33 : vector<8x128xf32>
    %cst_19 = arith.constant dense<0.000000e+00> : vector<8xf32>
    %35 = vector.multi_reduction <add>, %33, %cst_19 [1] : vector<8x128xf32> to vector<8xf32>
    %36 = vector.shape_cast %35 : vector<8xf32> to vector<8x1xf32>
    %37 = arith.addf %26, %36 : vector<8x1xf32>
    %38 = arith.mulf %33, %33 : vector<8x128xf32>
    %cst_20 = arith.constant dense<0.000000e+00> : vector<8xf32>
    %39 = vector.multi_reduction <add>, %38, %cst_20 [1] : vector<8x128xf32> to vector<8xf32>
    %40 = vector.shape_cast %39 : vector<8xf32> to vector<8x1xf32>
    %41 = arith.addf %30, %40 : vector<8x1xf32>
    %c4 = arith.constant 4 : index
    %c0_21 = arith.constant 0 : index
    %c0_22 = arith.constant 0 : index
    %42 = vector.load %arg1[%c4, %c0_21, %c0_22] : memref<8x8x128xf32, #tpu.memory_space<vmem>>, vector<1x8x128xf32>
    %43 = vector.shape_cast %42 : vector<1x8x128xf32> to vector<8x128xf32>
    %cst_23 = arith.constant dense<0.000000e+00> : vector<8x128xf32>
    %44 = tpu.matmul %0, %43, %cst_23 {dimension_numbers = #tpu.dot_dimension_numbers<[1], [0], [0], [1], [0, 0, 1, 1], [], []>} : vector<8x8xf32>, vector<8x128xf32>, vector<8x128xf32> -> vector<8x128xf32>
    %45 = arith.maximumf %34, %44 : vector<8x128xf32>
    %cst_24 = arith.constant dense<0.000000e+00> : vector<8xf32>
    %46 = vector.multi_reduction <add>, %44, %cst_24 [1] : vector<8x128xf32> to vector<8xf32>
    %47 = vector.shape_cast %46 : vector<8xf32> to vector<8x1xf32>
    %48 = arith.addf %37, %47 : vector<8x1xf32>
    %49 = arith.mulf %44, %44 : vector<8x128xf32>
    %cst_25 = arith.constant dense<0.000000e+00> : vector<8xf32>
    %50 = vector.multi_reduction <add>, %49, %cst_25 [1] : vector<8x128xf32> to vector<8xf32>
    %51 = vector.shape_cast %50 : vector<8xf32> to vector<8x1xf32>
    %52 = arith.addf %41, %51 : vector<8x1xf32>
    %c5 = arith.constant 5 : index
    %c0_26 = arith.constant 0 : index
    %c0_27 = arith.constant 0 : index
    %53 = vector.load %arg1[%c5, %c0_26, %c0_27] : memref<8x8x128xf32, #tpu.memory_space<vmem>>, vector<1x8x128xf32>
    %54 = vector.shape_cast %53 : vector<1x8x128xf32> to vector<8x128xf32>
    %cst_28 = arith.constant dense<0.000000e+00> : vector<8x128xf32>
    %55 = tpu.matmul %0, %54, %cst_28 {dimension_numbers = #tpu.dot_dimension_numbers<[1], [0], [0], [1], [0, 0, 1, 1], [], []>} : vector<8x8xf32>, vector<8x128xf32>, vector<8x128xf32> -> vector<8x128xf32>
    %56 = arith.maximumf %45, %55 : vector<8x128xf32>
    %cst_29 = arith.constant dense<0.000000e+00> : vector<8xf32>
    %57 = vector.multi_reduction <add>, %55, %cst_29 [1] : vector<8x128xf32> to vector<8xf32>
    %58 = vector.shape_cast %57 : vector<8xf32> to vector<8x1xf32>
    %59 = arith.addf %48, %58 : vector<8x1xf32>
    %60 = arith.mulf %55, %55 : vector<8x128xf32>
    %cst_30 = arith.constant dense<0.000000e+00> : vector<8xf32>
    %61 = vector.multi_reduction <add>, %60, %cst_30 [1] : vector<8x128xf32> to vector<8xf32>
    %62 = vector.shape_cast %61 : vector<8xf32> to vector<8x1xf32>
    %63 = arith.addf %52, %62 : vector<8x1xf32>
    %c6 = arith.constant 6 : index
    %c0_31 = arith.constant 0 : index
    %c0_32 = arith.constant 0 : index
    %64 = vector.load %arg1[%c6, %c0_31, %c0_32] : memref<8x8x128xf32, #tpu.memory_space<vmem>>, vector<1x8x128xf32>
    %65 = vector.shape_cast %64 : vector<1x8x128xf32> to vector<8x128xf32>
    %cst_33 = arith.constant dense<0.000000e+00> : vector<8x128xf32>
    %66 = tpu.matmul %0, %65, %cst_33 {dimension_numbers = #tpu.dot_dimension_numbers<[1], [0], [0], [1], [0, 0, 1, 1], [], []>} : vector<8x8xf32>, vector<8x128xf32>, vector<8x128xf32> -> vector<8x128xf32>
    %67 = arith.maximumf %56, %66 : vector<8x128xf32>
    %cst_34 = arith.constant dense<0.000000e+00> : vector<8xf32>
    %68 = vector.multi_reduction <add>, %66, %cst_34 [1] : vector<8x128xf32> to vector<8xf32>
    %69 = vector.shape_cast %68 : vector<8xf32> to vector<8x1xf32>
    %70 = arith.addf %59, %69 : vector<8x1xf32>
    %71 = arith.mulf %66, %66 : vector<8x128xf32>
    %cst_35 = arith.constant dense<0.000000e+00> : vector<8xf32>
    %72 = vector.multi_reduction <add>, %71, %cst_35 [1] : vector<8x128xf32> to vector<8xf32>
    %73 = vector.shape_cast %72 : vector<8xf32> to vector<8x1xf32>
    %74 = arith.addf %63, %73 : vector<8x1xf32>
    %c7 = arith.constant 7 : index
    %c0_36 = arith.constant 0 : index
    %c0_37 = arith.constant 0 : index
    %75 = vector.load %arg1[%c7, %c0_36, %c0_37] : memref<8x8x128xf32, #tpu.memory_space<vmem>>, vector<1x8x128xf32>
    %76 = vector.shape_cast %75 : vector<1x8x128xf32> to vector<8x128xf32>
    %cst_38 = arith.constant dense<0.000000e+00> : vector<8x128xf32>
    %77 = tpu.matmul %0, %76, %cst_38 {dimension_numbers = #tpu.dot_dimension_numbers<[1], [0], [0], [1], [0, 0, 1, 1], [], []>} : vector<8x8xf32>, vector<8x128xf32>, vector<8x128xf32> -> vector<8x128xf32>
    %78 = arith.maximumf %67, %77 : vector<8x128xf32>
    %cst_39 = arith.constant dense<0.000000e+00> : vector<8xf32>
    %79 = vector.multi_reduction <add>, %77, %cst_39 [1] : vector<8x128xf32> to vector<8xf32>
    %80 = vector.shape_cast %79 : vector<8xf32> to vector<8x1xf32>
    %81 = arith.addf %70, %80 : vector<8x1xf32>
    %82 = arith.mulf %77, %77 : vector<8x128xf32>
    %cst_40 = arith.constant dense<0.000000e+00> : vector<8xf32>
    %83 = vector.multi_reduction <add>, %82, %cst_40 [1] : vector<8x128xf32> to vector<8xf32>
    %84 = vector.shape_cast %83 : vector<8xf32> to vector<8x1xf32>
    %85 = arith.addf %74, %84 : vector<8x1xf32>
    %c0_41 = arith.constant 0 : index
    %c0_42 = arith.constant 0 : index
    %86 = vector.load %arg3[%c0_41, %c0_42] : memref<8x128xf32, #tpu.memory_space<vmem>>, vector<8x128xf32>
    tpu.vector_store %arg3[%c0_41, %c0_42], %78 {strides = array<i32>} : memref<8x128xf32, #tpu.memory_space<vmem>>, vector<8x128xf32>,
    %c0_43 = arith.constant 0 : index
    %c0_44 = arith.constant 0 : index
    %c0_45 = arith.constant 0 : index
    %87 = vector.load %arg4[%c0_43, %c0_44, %c0_45] : memref<1x8x1xf32, #tpu.memory_space<vmem>>, vector<1x8x1xf32>
    %88 = vector.shape_cast %87 : vector<1x8x1xf32> to vector<8x1xf32>
    %89 = vector.shape_cast %81 : vector<8x1xf32> to vector<1x8x1xf32>
    tpu.vector_store %arg4[%c0_43, %c0_44, %c0_45], %89 {strides = array<i32>} : memref<1x8x1xf32, #tpu.memory_space<vmem>>, vector<1x8x1xf32>,
    %c0_46 = arith.constant 0 : index
    %c0_47 = arith.constant 0 : index
    %c0_48 = arith.constant 0 : index
    %90 = vector.load %arg5[%c0_46, %c0_47, %c0_48] : memref<1x8x1xf32, #tpu.memory_space<vmem>>, vector<1x8x1xf32>
    %91 = vector.shape_cast %90 : vector<1x8x1xf32> to vector<8x1xf32>
    %92 = vector.shape_cast %85 : vector<8x1xf32> to vector<1x8x1xf32>
    tpu.vector_store %arg5[%c0_46, %c0_47, %c0_48], %92 {strides = array<i32>} : memref<1x8x1xf32, #tpu.memory_space<vmem>>, vector<1x8x1xf32>,
    return
  }
  func.func @transform_0(%arg0: i32) -> (i32, i32, i32) {
    %c0_i32 = arith.constant 0 : i32
    %c0_i32_0 = arith.constant 0 : i32
    %c0_i32_1 = arith.constant 0 : i32
    return %c0_i32, %c0_i32_0, %arg0 : i32, i32, i32
  }
  func.func @transform_1(%arg0: i32) -> (i32, i32) {
    %c0_i32 = arith.constant 0 : i32
    %c0_i32_0 = arith.constant 0 : i32
    %c0_i32_1 = arith.constant 0 : i32
    return %c0_i32, %c0_i32_0 : i32, i32
  }
  func.func @transform_2(%arg0: i32) -> (i32, i32) {
    %c0_i32 = arith.constant 0 : i32
    %c0_i32_0 = arith.constant 0 : i32
    return %c0_i32, %arg0 : i32, i32
  }
  func.func @transform_3(%arg0: i32) -> (i32, i32, i32) {
    %c0_i32 = arith.constant 0 : i32
    %c0_i32_0 = arith.constant 0 : i32
    %c0_i32_1 = arith.constant 0 : i32
    return %arg0, %c0_i32, %c0_i32_0 : i32, i32, i32
  }
  func.func @transform_4(%arg0: i32) -> (i32, i32, i32) {
    %c0_i32 = arith.constant 0 : i32
    %c0_i32_0 = arith.constant 0 : i32
    %c0_i32_1 = arith.constant 0 : i32
    return %arg0, %c0_i32, %c0_i32_0 : i32, i32, i32
  }
}

</mosaic_0001>

<bundles_post_ra>
// kernel: squeeze.3
= control target key start
LH: loop header
LB: loop body
LE: loop exit
PB: predicated region body
PF: predicated region fallthrough
CT: control target
= control target key end

     0   :  { %vm6_vm0 = vcmask 1043458   ;;  %vm10_vm1 = vcmask 1045508   ;;  %vm14_vm2 = vcmask 1047558   ;;  %s85_s6 = smov 3  ;;  %s88_s7 = smov 12  ;;  %vm16_vm3 = vcmask 64512   ;;  %s1472_s0 = inlined_call_operand.vmem [shape: s32[1,256,8], index: 0, kind: input, shape index: {}]   ;;  %s1473_s1 = inlined_call_operand.vmem [shape: s32[2048], index: 1, kind: output, shape index: {}]  }
   0x1   :  { %v728_v0 = vld [vmem:[%s1472_s0 + $0xe] ss:$16 sm:%s85_s6]   ;;  %s93_s12 = smov 48  ;;  %s98_s13 = smov 192  ;;  %vm59_vm4 = vcmask 1048512   ;;  %vm104_vm5 = vcmask 982912  }
   0x2   :  { %v729_v1 = vld [vmem:[%s1472_s0 + $0xe] ss:$16 sm:%s88_s7]   ;;  %s40_s18 = smov 3  ;;  %s43_s21 = smov 12  ;;  %vm149_vm6 = vcmask 917312   ;;  %vm194_vm7 = vcmask 851712  }
   0x3   :  { %v91_v2 = vsel %vm6_vm0, %v729_v1, %v728_v0  ;;  %v730_v3 = vld [vmem:[%s1472_s0 + $0xe] ss:$16 sm:%s93_s12]   ;;  %v719_v6 = vld [vmem:[%s1472_s0 + $0xf] ss:$16 sm:%s40_s18]   ;;  %s48_s22 = smov 48  ;;  %s53_s27 = smov 192 }
   0x4   :  { %v731_v4 = vld [vmem:[%s1472_s0 + $0xe] ss:$16 sm:%s98_s13]   ;;  %v96_v5 = vsel %vm10_vm1, %v730_v3, %v91_v2  ;;  %v720_v8 = vld [vmem:[%s1472_s0 + $0xf] ss:$16 sm:%s43_s21]   ;;  %s869_s28 = smov 112   ;;  %s107_s2 = smov 3 }
   0x5   :  { %v101_v7 = vsel %vm14_vm2, %v731_v4, %v96_v5  ;;  %v721_v9 = vld [vmem:[%s1472_s0 + $0xf] ss:$16 sm:%s48_s22]   ;;  %v46_v10 = vsel %vm6_vm0, %v720_v8, %v719_v6  ;;  %s110_s3 = smov 12  ;;  %v732_v13 = vld [vmem:[%s1472_s0 + $0x8e] ss:$16 sm:%s107_s2]   ;;  %s115_s8 = smov 48 }
   0x6   :  { %102 = vrot.lane.b32.xlu1 %v101_v7, %s869_s28  ;;  %v722_v11 = vld [vmem:[%s1472_s0 + $0xf] ss:$16 sm:%s53_s27]   ;;  %v51_v12 = vsel %vm10_vm1, %v721_v9, %v46_v10  ;;  %s120_s9 = smov 192  ;;  %s62_s14 = smov 3  ;;  %vm239_vm8 = vcmask 786112   ;;  %vm284_vm9 = vcmask 720512  }
   0x7   :  { %v733_v14 = vld [vmem:[%s1472_s0 + $0x8e] ss:$16 sm:%s110_s3]   ;;  %v56_v15 = vsel %vm14_vm2, %v722_v11, %v51_v12  ;;  %s65_s15 = smov 12  ;;  %s870_s16 = smov 120   ;;  %v723_v20 = vld [vmem:[%s1472_s0 + $0x8f] ss:$16 sm:%s62_s14]  }
   0x8   :  { %v113_v16 = vsel %vm6_vm0, %v733_v14, %v732_v13  ;;  %v734_v17 = vld [vmem:[%s1472_s0 + $0x8e] ss:$16 sm:%s115_s8]   ;;  %57 = vrot.lane.b32.xlu0 %v56_v15, %s870_s16  ;;  %s70_s19 = smov 48  ;;  %s75_s20 = smov 192  ;;  %vm329_vm10 = vcmask 654912   ;;  %vm374_vm11 = vcmask 589312  }
   0x9   :  { %v735_v18 = vld [vmem:[%s1472_s0 + $0x8e] ss:$16 sm:%s120_s9]   ;;  %v118_v19 = vsel %vm10_vm1, %v734_v17, %v113_v16  ;;  %v724_v22 = vld [vmem:[%s1472_s0 + $0x8f] ss:$16 sm:%s65_s15]   ;;  %s152_s25 = smov 3  ;;  %s160_s29 = smov 48 }
   0xa   :  { %v123_v21 = vsel %vm14_vm2, %v735_v18, %v118_v19  ;;  %v725_v23 = vld [vmem:[%s1472_s0 + $0x8f] ss:$16 sm:%s70_s19]   ;;  %v68_v24 = vsel %vm6_vm0, %v724_v22, %v723_v20  ;;  %v741_v27 = vld [vmem:[%s1472_s0 + $0x8d] ss:$16 sm:%s152_s25]   ;;  %s165_s5 = smov 192  ;;  %s130_s6 = smov 3 }
   0xb   :  { %124 = vrot.lane.b32.xlu1 %v123_v21, %s869_s28  ;;  %v726_v25 = vld [vmem:[%s1472_s0 + $0x8f] ss:$16 sm:%s75_s20]   ;;  %s155_s28 = smov 12  ;;  %v73_v26 = vsel %vm10_vm1, %v725_v23, %v68_v24  ;;  %s133_s11 = smov 12  ;;  %vm419_vm12 = vcmask 523712   ;;  %vm464_vm13 = vcmask 458112  }
   0xc   :  { %v742_v28 = vld [vmem:[%s1472_s0 + $0x8d] ss:$16 sm:%s155_s28]   ;;  %v78_v29 = vsel %vm14_vm2, %v726_v25, %v73_v26  ;;  %s138_s12 = smov 48  ;;  %s143_s15 = smov 192  ;;  %vm509_vm14 = vcmask 392512   ;;  %vm554_vm15 = vcmask 326912  }
   0xd   :  { %v158_v30 = vsel %vm6_vm0, %v742_v28, %v741_v27  ;;  %v743_v31 = vld [vmem:[%s1472_s0 + $0x8d] ss:$16 sm:%s160_s29]   ;;  %79 = vrot.lane.b32.xlu0 %v78_v29, %s870_s16  ;;  %s197_s20 = smov 3  ;;  %s200_s21 = smov 12 }
   0xe   :  { %v744_v32 = vld [vmem:[%s1472_s0 + $0x8d] ss:$16 sm:%s165_s5]   ;;  %v163_v33 = vsel %vm10_vm1, %v743_v31, %v158_v30  ;;  %s871_s22 = smov 104   ;;  %s205_s25 = smov 48  ;;  %v750_v41 = vld [vmem:[%s1472_s0 + $0x8c] ss:$16 sm:%s197_s20]  }
   0xf   :  { %v737_v34 = vld [vmem:[%s1472_s0 + $0xd] ss:$16 sm:%s130_s6]   ;;  %v168_v35 = vsel %vm14_vm2, %v744_v32, %v163_v33  ;;  %s210_s26 = smov 192  ;;  %v751_v42 = vld [vmem:[%s1472_s0 + $0x8c] ss:$16 sm:%s200_s21]   ;;  %s175_s2 = smov 3 }
  0x10   :  { %v738_v36 = vld [vmem:[%s1472_s0 + $0xd] ss:$16 sm:%s133_s11]   ;;  %169 = vrot.lane.b32.xlu1 %v168_v35, %s871_s22  ;;  %s178_s3 = smov 12  ;;  %v203_v44 = vsel %vm6_vm0, %v751_v42, %v750_v41  ;;  %s183_s8 = smov 48 }
  0x11   :  { %v739_v37 = vld [vmem:[%s1472_s0 + $0xd] ss:$16 sm:%s138_s12]   ;;  %v136_v38 = vsel %vm6_vm0, %v738_v36, %v737_v34  ;;  %v752_v45 = vld [vmem:[%s1472_s0 + $0x8c] ss:$16 sm:%s205_s25]   ;;  %s188_s9 = smov 192  ;;  %s242_s12 = smov 3 }
  0x12   :  { %v740_v39 = vld [vmem:[%s1472_s0 + $0xd] ss:$16 sm:%s143_s15]   ;;  %v141_v40 = vsel %vm10_vm1, %v739_v37, %v136_v38  ;;  %v753_v46 = vld [vmem:[%s1472_s0 + $0x8c] ss:$16 sm:%s210_s26]   ;;  %v208_v47 = vsel %vm10_vm1, %v752_v45, %v203_v44  ;;  %s245_s17 = smov 12  ;;  %s250_s18 = smov 48 }
  0x13   :  { %v146_v43 = vsel %vm14_vm2, %v740_v39, %v141_v40  ;;  %v746_v48 = vld [vmem:[%s1472_s0 + $0xc] ss:$16 sm:%s175_s2]   ;;  %v213_v49 = vsel %vm14_vm2, %v753_v46, %v208_v47  ;;  %s872_s19 = smov 96   ;;  %s220_s23 = smov 3  ;;  %v759_v55 = vld [vmem:[%s1472_s0 + $0x8b] ss:$16 sm:%s242_s12]  }
  0x14   :  { %147 = vrot.lane.b32.xlu0 %v146_v43, %s871_s22  ;;  %v747_v50 = vld [vmem:[%s1472_s0 + $0xc] ss:$16 sm:%s178_s3]   ;;  %214 = vrot.lane.b32.xlu1 %v213_v49, %s872_s19  ;;  %s255_s22 = smov 192  ;;  %s223_s28 = smov 12 }
  0x15   :  { %v748_v51 = vld [vmem:[%s1472_s0 + $0xc] ss:$16 sm:%s183_s8]   ;;  %v181_v52 = vsel %vm6_vm0, %v747_v50, %v746_v48  ;;  %v760_v56 = vld [vmem:[%s1472_s0 + $0x8b] ss:$16 sm:%s245_s17]   ;;  %s228_s29 = smov 48  ;;  %s233_s5 = smov 192 }
  0x16   :  { %v749_v53 = vld [vmem:[%s1472_s0 + $0xc] ss:$16 sm:%s188_s9]   ;;  %v186_v54 = vsel %vm10_vm1, %v748_v51, %v181_v52  ;;  %v248_v58 = vsel %vm6_vm0, %v760_v56, %v759_v55  ;;  %v761_v59 = vld [vmem:[%s1472_s0 + $0x8b] ss:$16 sm:%s250_s18]   ;;  %s287_s8 = smov 3  ;;  %s290_s9 = smov 12 }
  0x17   :  { %v191_v57 = vsel %vm14_vm2, %v749_v53, %v186_v54  ;;  %v762_v60 = vld [vmem:[%s1472_s0 + $0x8b] ss:$16 sm:%s255_s22]   ;;  %v253_v61 = vsel %vm10_vm1, %v761_v59, %v248_v58  ;;  %s295_s14 = smov 48  ;;  %s300_s15 = smov 192  ;;  %v768_v5 = vld [vmem:[%s1472_s0 + $0x8a] ss:$16 sm:%s287_s8]  }
  0x18   :  { %192 = vrot.lane.b32.xlu0 %v191_v57, %s872_s19  ;;  %v755_v62 = vld [vmem:[%s1472_s0 + $0xb] ss:$16 sm:%s220_s23]   ;;  %v258_v63 = vsel %vm14_vm2, %v762_v60, %v253_v61  ;;  %s873_s16 = smov 88   ;;  %s265_s19 = smov 3 }
  0x19   :  { %v756_v0 = vld [vmem:[%s1472_s0 + $0xb] ss:$16 sm:%s223_s28]   ;;  %259 = vrot.lane.b32.xlu1 %v258_v63, %s873_s16  ;;  %s268_s24 = smov 12  ;;  %s273_s25 = smov 48 }
  0x1a   :  { %v757_v1 = vld [vmem:[%s1472_s0 + $0xb] ss:$16 sm:%s228_s29]   ;;  %v226_v2 = vsel %vm6_vm0, %v756_v0, %v755_v62  ;;  %v769_v6 = vld [vmem:[%s1472_s0 + $0x8a] ss:$16 sm:%s290_s9]   ;;  %s278_s30 = smov 192  ;;  %s332_s4 = smov 3 }
  0x1b   :  { %v758_v3 = vld [vmem:[%s1472_s0 + $0xb] ss:$16 sm:%s233_s5]   ;;  %v231_v4 = vsel %vm10_vm1, %v757_v1, %v226_v2  ;;  %v293_v8 = vsel %vm6_vm0, %v769_v6, %v768_v5  ;;  %v770_v9 = vld [vmem:[%s1472_s0 + $0x8a] ss:$16 sm:%s295_s14]   ;;  %s335_s5 = smov 12  ;;  %s340_s10 = smov 48 }
  0x1c   :  { %v236_v7 = vsel %vm14_vm2, %v758_v3, %v231_v4  ;;  %v771_v10 = vld [vmem:[%s1472_s0 + $0x8a] ss:$16 sm:%s300_s15]   ;;  %v298_v11 = vsel %vm10_vm1, %v770_v9, %v293_v8  ;;  %s345_s11 = smov 192  ;;  %s874_s12 = smov 80   ;;  %v777_v19 = vld [vmem:[%s1472_s0 + $0x89] ss:$16 sm:%s332_s4]  }
  0x1d   :  { %237 = vrot.lane.b32.xlu0 %v236_v7, %s873_s16  ;;  %v764_v12 = vld [vmem:[%s1472_s0 + $0xa] ss:$16 sm:%s265_s19]   ;;  %v303_v13 = vsel %vm14_vm2, %v771_v10, %v298_v11  ;;  %s310_s15 = smov 3  ;;  %s313_s20 = smov 12 }
  0x1e   :  { %v765_v14 = vld [vmem:[%s1472_s0 + $0xa] ss:$16 sm:%s268_s24]   ;;  %304 = vrot.lane.b32.xlu1 %v303_v13, %s874_s12  ;;  %s318_s21 = smov 48  ;;  %s323_s26 = smov 192 }
  0x1f   :  { %v766_v15 = vld [vmem:[%s1472_s0 + $0xa] ss:$16 sm:%s273_s25]   ;;  %v271_v16 = vsel %vm6_vm0, %v765_v14, %v764_v12  ;;  %v778_v20 = vld [vmem:[%s1472_s0 + $0x89] ss:$16 sm:%s335_s5]   ;;  %s377_s29 = smov 3  ;;  %s385_s6 = smov 48 }
  0x20   :  { %v767_v17 = vld [vmem:[%s1472_s0 + $0xa] ss:$16 sm:%s278_s30]   ;;  %v276_v18 = vsel %vm10_vm1, %v766_v15, %v271_v16  ;;  %v338_v22 = vsel %vm6_vm0, %v778_v20, %v777_v19  ;;  %v779_v23 = vld [vmem:[%s1472_s0 + $0x89] ss:$16 sm:%s340_s10]   ;;  %s380_s30 = smov 12  ;;  %s390_s7 = smov 192 }
  0x21   :  { %v281_v21 = vsel %vm14_vm2, %v767_v17, %v276_v18  ;;  %v780_v24 = vld [vmem:[%s1472_s0 + $0x89] ss:$16 sm:%s345_s11]   ;;  %v343_v25 = vsel %vm10_vm1, %v779_v23, %v338_v22  ;;  %s875_s8 = smov 72   ;;  %s355_s11 = smov 3  ;;  %v786_v33 = vld [vmem:[%s1472_s0 + $0x88] ss:$16 sm:%s377_s29]  }
  0x22   :  { %282 = vrot.lane.b32.xlu0 %v281_v21, %s874_s12  ;;  %v773_v26 = vld [vmem:[%s1472_s0 + $0x9] ss:$16 sm:%s310_s15]   ;;  %v348_v27 = vsel %vm14_vm2, %v780_v24, %v343_v25  ;;  %s358_s16 = smov 12  ;;  %s363_s17 = smov 48 }
  0x23   :  { %v774_v28 = vld [vmem:[%s1472_s0 + $0x9] ss:$16 sm:%s313_s20]   ;;  %349 = vrot.lane.b32.xlu1 %v348_v27, %s875_s8  ;;  %s368_s22 = smov 192  ;;  %s422_s25 = smov 3 }
  0x24   :  { %v775_v29 = vld [vmem:[%s1472_s0 + $0x9] ss:$16 sm:%s318_s21]   ;;  %v316_v30 = vsel %vm6_vm0, %v774_v28, %v773_v26  ;;  %v787_v34 = vld [vmem:[%s1472_s0 + $0x88] ss:$16 sm:%s380_s30]   ;;  %s430_s2 = smov 48  ;;  %s435_s3 = smov 192 }
  0x25   :  { %v776_v31 = vld [vmem:[%s1472_s0 + $0x9] ss:$16 sm:%s323_s26]   ;;  %v321_v32 = vsel %vm10_vm1, %v775_v29, %v316_v30  ;;  %v383_v36 = vsel %vm6_vm0, %v787_v34, %v786_v33  ;;  %v788_v37 = vld [vmem:[%s1472_s0 + $0x88] ss:$16 sm:%s385_s6]   ;;  %s425_s26 = smov 12  ;;  %s876_s4 = smov 64  }
  0x26   :  { %v326_v35 = vsel %vm14_vm2, %v776_v31, %v321_v32  ;;  %v789_v38 = vld [vmem:[%s1472_s0 + $0x88] ss:$16 sm:%s390_s7]   ;;  %v388_v39 = vsel %vm10_vm1, %v788_v37, %v383_v36  ;;  %s400_s7 = smov 3  ;;  %v795_v47 = vld [vmem:[%s1472_s0 + $0x87] ss:$16 sm:%s422_s25]   ;;  %s403_s12 = smov 12 }
  0x27   :  { %327 = vrot.lane.b32.xlu0 %v326_v35, %s875_s8  ;;  %v782_v40 = vld [vmem:[%s1472_s0 + $0x8] ss:$16 sm:%s355_s11]   ;;  %v393_v41 = vsel %vm14_vm2, %v789_v38, %v388_v39  ;;  %s408_s13 = smov 48  ;;  %s413_s18 = smov 192 }
  0x28   :  { %v783_v42 = vld [vmem:[%s1472_s0 + $0x8] ss:$16 sm:%s358_s16]   ;;  %394 = vrot.lane.b32.xlu1 %v393_v41, %s876_s4  ;;  %s467_s21 = smov 3  ;;  %s475_s27 = smov 48 }
  0x29   :  { %v784_v43 = vld [vmem:[%s1472_s0 + $0x8] ss:$16 sm:%s363_s17]   ;;  %v361_v44 = vsel %vm6_vm0, %v783_v42, %v782_v40  ;;  %v796_v48 = vld [vmem:[%s1472_s0 + $0x87] ss:$16 sm:%s425_s26]   ;;  %s480_s28 = smov 192  ;;  %s877_s29 = smov 56  }
  0x2a   :  { %v785_v45 = vld [vmem:[%s1472_s0 + $0x8] ss:$16 sm:%s368_s22]   ;;  %v366_v46 = vsel %vm10_vm1, %v784_v43, %v361_v44  ;;  %v428_v50 = vsel %vm6_vm0, %v796_v48, %v795_v47  ;;  %v797_v51 = vld [vmem:[%s1472_s0 + $0x87] ss:$16 sm:%s430_s2]   ;;  %s470_s22 = smov 12  ;;  %s448_s8 = smov 12 }
  0x2b   :  { %v371_v49 = vsel %vm14_vm2, %v785_v45, %v366_v46  ;;  %v798_v52 = vld [vmem:[%s1472_s0 + $0x87] ss:$16 sm:%s435_s3]   ;;  %v433_v53 = vsel %vm10_vm1, %v797_v51, %v428_v50  ;;  %s445_s3 = smov 3  ;;  %v804_v61 = vld [vmem:[%s1472_s0 + $0x86] ss:$16 sm:%s467_s21]   ;;  %s453_s9 = smov 48 }
  0x2c   :  { %372 = vrot.lane.b32.xlu0 %v371_v49, %s876_s4  ;;  %v791_v54 = vld [vmem:[%s1472_s0 + $0x7] ss:$16 sm:%s400_s7]   ;;  %v438_v55 = vsel %vm14_vm2, %v798_v52, %v433_v53  ;;  %s458_s14 = smov 192  ;;  %s512_s17 = smov 3 }
  0x2d   :  { %v792_v56 = vld [vmem:[%s1472_s0 + $0x7] ss:$16 sm:%s403_s12]   ;;  %439 = vrot.lane.b32.xlu1 %v438_v55, %s877_s29  ;;  %s520_s23 = smov 48  ;;  %s525_s24 = smov 192 }
  0x2e   :  { %v793_v57 = vld [vmem:[%s1472_s0 + $0x7] ss:$16 sm:%s408_s13]   ;;  %v406_v58 = vsel %vm6_vm0, %v792_v56, %v791_v54  ;;  %v805_v62 = vld [vmem:[%s1472_s0 + $0x86] ss:$16 sm:%s470_s22]   ;;  %s878_s25 = smov 48   ;;  %s493_s4 = smov 12 }
  0x2f   :  { %v794_v59 = vld [vmem:[%s1472_s0 + $0x7] ss:$16 sm:%s413_s18]   ;;  %v411_v60 = vsel %vm10_vm1, %v793_v57, %v406_v58  ;;  %v473_v0 = vsel %vm6_vm0, %v805_v62, %v804_v61  ;;  %v806_v1 = vld [vmem:[%s1472_s0 + $0x86] ss:$16 sm:%s475_s27]   ;;  %s515_s18 = smov 12  ;;  %s498_s5 = smov 48 }
  0x30   :  { %v416_v63 = vsel %vm14_vm2, %v794_v59, %v411_v60  ;;  %v807_v2 = vld [vmem:[%s1472_s0 + $0x86] ss:$16 sm:%s480_s28]   ;;  %v478_v3 = vsel %vm10_vm1, %v806_v1, %v473_v0  ;;  %s490_s28 = smov 3  ;;  %v813_v11 = vld [vmem:[%s1472_s0 + $0x85] ss:$16 sm:%s512_s17]   ;;  %s503_s10 = smov 192 }
  0x31   :  { %417 = vrot.lane.b32.xlu0 %v416_v63, %s877_s29  ;;  %v800_v4 = vld [vmem:[%s1472_s0 + $0x6] ss:$16 sm:%s445_s3]   ;;  %v483_v5 = vsel %vm14_vm2, %v807_v2, %v478_v3  ;;  %s557_s13 = smov 3  ;;  %s565_s19 = smov 48 }
  0x32   :  { %v801_v6 = vld [vmem:[%s1472_s0 + $0x6] ss:$16 sm:%s448_s8]   ;;  %484 = vrot.lane.b32.xlu1 %v483_v5, %s878_s25  ;;  %s570_s20 = smov 192  ;;  %s879_s21 = smov 40  }
  0x33   :  { %v802_v7 = vld [vmem:[%s1472_s0 + $0x6] ss:$16 sm:%s453_s9]   ;;  %v451_v8 = vsel %vm6_vm0, %v801_v6, %v800_v4  ;;  %v814_v12 = vld [vmem:[%s1472_s0 + $0x85] ss:$16 sm:%s515_s18]   ;;  %s538_s29 = smov 12  ;;  %s543_s30 = smov 48 }
  0x34   :  { %v803_v9 = vld [vmem:[%s1472_s0 + $0x6] ss:$16 sm:%s458_s14]   ;;  %v456_v10 = vsel %vm10_vm1, %v802_v7, %v451_v8  ;;  %v518_v14 = vsel %vm6_vm0, %v814_v12, %v813_v11  ;;  %v815_v15 = vld [vmem:[%s1472_s0 + $0x85] ss:$16 sm:%s520_s23]   ;;  %s560_s14 = smov 12  ;;  %s548_s6 = smov 192 }
  0x35   :  { %v461_v13 = vsel %vm14_vm2, %v803_v9, %v456_v10  ;;  %v816_v16 = vld [vmem:[%s1472_s0 + $0x85] ss:$16 sm:%s525_s24]   ;;  %v523_v17 = vsel %vm10_vm1, %v815_v15, %v518_v14  ;;  %s535_s24 = smov 3  ;;  %v822_v25 = vld [vmem:[%s1472_s0 + $0x84] ss:$16 sm:%s557_s13]   ;;  %s602_s9 = smov 3 }
  0x36   :  { %462 = vrot.lane.b32.xlu0 %v461_v13, %s878_s25  ;;  %v809_v18 = vld [vmem:[%s1472_s0 + $0x5] ss:$16 sm:%s490_s28]   ;;  %v528_v19 = vsel %vm14_vm2, %v816_v16, %v523_v17  ;;  %s610_s15 = smov 48  ;;  %s615_s16 = smov 192 }
  0x37   :  { %v810_v20 = vld [vmem:[%s1472_s0 + $0x5] ss:$16 sm:%s493_s4]   ;;  %529 = vrot.lane.b32.xlu1 %v528_v19, %s879_s21  ;;  %s880_s17 = smov 32   ;;  %s583_s25 = smov 12 }
  0x38   :  { %v811_v21 = vld [vmem:[%s1472_s0 + $0x5] ss:$16 sm:%s498_s5]   ;;  %v496_v22 = vsel %vm6_vm0, %v810_v20, %v809_v18  ;;  %v823_v26 = vld [vmem:[%s1472_s0 + $0x84] ss:$16 sm:%s560_s14]   ;;  %s588_s26 = smov 48  ;;  %s593_s2 = smov 192 }
  0x39   :  { %v812_v23 = vld [vmem:[%s1472_s0 + $0x5] ss:$16 sm:%s503_s10]   ;;  %v501_v24 = vsel %vm10_vm1, %v811_v21, %v496_v22  ;;  %v563_v28 = vsel %vm6_vm0, %v823_v26, %v822_v25  ;;  %v824_v29 = vld [vmem:[%s1472_s0 + $0x84] ss:$16 sm:%s565_s19]   ;;  %s605_s10 = smov 12  ;;  %s647_s5 = smov 3 }
  0x3a   :  { %v506_v27 = vsel %vm14_vm2, %v812_v23, %v501_v24  ;;  %v825_v30 = vld [vmem:[%s1472_s0 + $0x84] ss:$16 sm:%s570_s20]   ;;  %v568_v31 = vsel %vm10_vm1, %v824_v29, %v563_v28  ;;  %s580_s20 = smov 3  ;;  %v831_v39 = vld [vmem:[%s1472_s0 + $0x83] ss:$16 sm:%s602_s9]   ;;  %s655_s11 = smov 48 }
  0x3b   :  { %507 = vrot.lane.b32.xlu0 %v506_v27, %s879_s21  ;;  %v818_v32 = vld [vmem:[%s1472_s0 + $0x4] ss:$16 sm:%s535_s24]   ;;  %v573_v33 = vsel %vm14_vm2, %v825_v30, %v568_v31  ;;  %s660_s12 = smov 192  ;;  %s881_s13 = smov 24  }
  0x3c   :  { %v819_v34 = vld [vmem:[%s1472_s0 + $0x4] ss:$16 sm:%s538_s29]   ;;  %574 = vrot.lane.b32.xlu1 %v573_v33, %s880_s17  ;;  %s628_s21 = smov 12  ;;  %s633_s22 = smov 48 }
  0x3d   :  { %v820_v35 = vld [vmem:[%s1472_s0 + $0x4] ss:$16 sm:%s543_s30]   ;;  %v541_v36 = vsel %vm6_vm0, %v819_v34, %v818_v32  ;;  %v832_v40 = vld [vmem:[%s1472_s0 + $0x83] ss:$16 sm:%s605_s10]   ;;  %s638_s27 = smov 192  ;;  %s692_s30 = smov 3 }
  0x3e   :  { %v821_v37 = vld [vmem:[%s1472_s0 + $0x4] ss:$16 sm:%s548_s6]   ;;  %v546_v38 = vsel %vm10_vm1, %v820_v35, %v541_v36  ;;  %v608_v42 = vsel %vm6_vm0, %v832_v40, %v831_v39  ;;  %v833_v43 = vld [vmem:[%s1472_s0 + $0x83] ss:$16 sm:%s610_s15]   ;;  %s650_s6 = smov 12  ;;  %s700_s7 = smov 48 }
  0x3f   :  { %v551_v41 = vsel %vm14_vm2, %v821_v37, %v546_v38  ;;  %v834_v44 = vld [vmem:[%s1472_s0 + $0x83] ss:$16 sm:%s615_s16]   ;;  %v613_v45 = vsel %vm10_vm1, %v833_v43, %v608_v42  ;;  %s625_s16 = smov 3  ;;  %v840_v53 = vld [vmem:[%s1472_s0 + $0x82] ss:$16 sm:%s647_s5]   ;;  %s705_s8 = smov 192 }
  0x40   :  { %552 = vrot.lane.b32.xlu0 %v551_v41, %s880_s17  ;;  %v827_v46 = vld [vmem:[%s1472_s0 + $0x3] ss:$16 sm:%s580_s20]   ;;  %v618_v47 = vsel %vm14_vm2, %v834_v44, %v613_v45  ;;  %s882_s9 = smov 16   ;;  %s673_s17 = smov 12 }
  0x41   :  { %v828_v48 = vld [vmem:[%s1472_s0 + $0x3] ss:$16 sm:%s583_s25]   ;;  %619 = vrot.lane.b32.xlu1 %v618_v47, %s881_s13  ;;  %s678_s18 = smov 48  ;;  %s683_s23 = smov 192 }
  0x42   :  { %v829_v49 = vld [vmem:[%s1472_s0 + $0x3] ss:$16 sm:%s588_s26]   ;;  %v586_v50 = vsel %vm6_vm0, %v828_v48, %v827_v46  ;;  %v841_v54 = vld [vmem:[%s1472_s0 + $0x82] ss:$16 sm:%s650_s6]   ;;  %s2_s26 = smov 3  ;;  %s8_s3 = smov 48 }
  0x43   :  { %v830_v51 = vld [vmem:[%s1472_s0 + $0x3] ss:$16 sm:%s593_s2]   ;;  %v591_v52 = vsel %vm10_vm1, %v829_v49, %v586_v50  ;;  %v653_v56 = vsel %vm6_vm0, %v841_v54, %v840_v53  ;;  %v842_v57 = vld [vmem:[%s1472_s0 + $0x82] ss:$16 sm:%s655_s11]   ;;  %s695_s2 = smov 12  ;;  %s12_s4 = smov 192 }
  0x44   :  { %v596_v55 = vsel %vm14_vm2, %v830_v51, %v591_v52  ;;  %v843_v58 = vld [vmem:[%s1472_s0 + $0x82] ss:$16 sm:%s660_s12]   ;;  %v658_v59 = vsel %vm10_vm1, %v842_v57, %v653_v56  ;;  %s670_s12 = smov 3  ;;  %v849_v3 = vld [vmem:[%s1472_s0 + $0x81] ss:$16 sm:%s692_s30]   ;;  %s883_s5 = smov 8  }
  0x45   :  { %597 = vrot.lane.b32.xlu0 %v596_v55, %s881_s13  ;;  %v836_v60 = vld [vmem:[%s1472_s0 + $0x2] ss:$16 sm:%s625_s16]   ;;  %v663_v61 = vsel %vm14_vm2, %v843_v58, %v658_v59  ;;  %s22_s13 = smov 12  ;;  %s27_s14 = smov 48 }
  0x46   :  { %v837_v62 = vld [vmem:[%s1472_s0 + $0x2] ss:$16 sm:%s628_s21]   ;;  %664 = vrot.lane.b32.xlu1 %v663_v61, %s882_s9  ;;  %s32_s19 = smov 192 }
  0x47   :  { %v838_v63 = vld [vmem:[%s1472_s0 + $0x2] ss:$16 sm:%s633_s22]   ;;  %v631_v0 = vsel %vm6_vm0, %v837_v62, %v836_v60  ;;  %v850_v4 = vld [vmem:[%s1472_s0 + $0x81] ss:$16 sm:%s695_s2]  }
  0x48   :  { %v839_v1 = vld [vmem:[%s1472_s0 + $0x2] ss:$16 sm:%s638_s27]   ;;  %v636_v2 = vsel %vm10_vm1, %v838_v63, %v631_v0  ;;  %v698_v6 = vsel %vm6_vm0, %v850_v4, %v849_v3  ;;  %v851_v7 = vld [vmem:[%s1472_s0 + $0x81] ss:$16 sm:%s700_s7]   ;;  %s4_s27 = smov 12 }
  0x49   :  { %v641_v5 = vsel %vm14_vm2, %v839_v1, %v636_v2  ;;  %v852_v8 = vld [vmem:[%s1472_s0 + $0x81] ss:$16 sm:%s705_s8]   ;;  %v703_v9 = vsel %vm10_vm1, %v851_v7, %v698_v6  ;;  %s19_s8 = smov 3  ;;  %v3_v17 = vld [vmem:[%s1472_s0] ss:$16 sm:%s2_s26]  }
  0x4a   :  { %642 = vrot.lane.b32.xlu0 %v641_v5, %s882_s9  ;;  %v845_v10 = vld [vmem:[%s1472_s0 + $0x1] ss:$16 sm:%s670_s12]   ;;  %v708_v11 = vsel %vm14_vm2, %v852_v8, %v703_v9 }
  0x4b   :  { %v846_v12 = vld [vmem:[%s1472_s0 + $0x1] ss:$16 sm:%s673_s17]   ;;  %709 = vrot.lane.b32.xlu1 %v708_v11, %s883_s5 }
  0x4c   :  { %v847_v13 = vld [vmem:[%s1472_s0 + $0x1] ss:$16 sm:%s678_s18]   ;;  %v676_v14 = vsel %vm6_vm0, %v846_v12, %v845_v10  ;;  %v5_v18 = vld [vmem:[%s1472_s0] ss:$16 sm:%s4_s27]  }
  0x4d   :  { %v848_v15 = vld [vmem:[%s1472_s0 + $0x1] ss:$16 sm:%s683_s23]   ;;  %v681_v16 = vsel %vm10_vm1, %v847_v13, %v676_v14  ;;  %v7_v20 = vsel %vm6_vm0, %v5_v18, %v3_v17  ;;  %v9_v21 = vld [vmem:[%s1472_s0] ss:$16 sm:%s8_s3]  }
  0x4e   :  { %v686_v19 = vsel %vm14_vm2, %v848_v15, %v681_v16  ;;  %v13_v22 = vld [vmem:[%s1472_s0] ss:$16 sm:%s12_s4]   ;;  %v11_v23 = vsel %vm10_vm1, %v9_v21, %v7_v20 }
  0x4f   :  { %687 = vrot.lane.b32.xlu0 %v686_v19, %s883_s5  ;;  %v714_v24 = vld [vmem:[%s1472_s0 + $0x80] ss:$16 sm:%s19_s8]   ;;  %v15_v25 = vsel %vm14_vm2, %v13_v22, %v11_v23 }
  0x50   :  { %v715_v26 = vld [vmem:[%s1472_s0 + $0x80] ss:$16 sm:%s22_s13]   ;;  %17 = vst.msk [vmem:[%s1473_s1] sm:$0xff] %vm16_vm3, %v15_v25  }
  0x51   :  { %v716_v27 = vld [vmem:[%s1472_s0 + $0x80] ss:$16 sm:%s27_s14]   ;;  %v25_v28 = vsel %vm6_vm0, %v715_v26, %v714_v24  ;;  %vm599_vm0 = vcmask 261312  }
  0x52   :  { %v717_v29 = vld [vmem:[%s1472_s0 + $0x80] ss:$16 sm:%s32_s19]   ;;  %v30_v30 = vsel %vm10_vm1, %v716_v27, %v25_v28  ;;  %vm644_vm1 = vcmask 195712  }
  0x53   :  { %v35_v31 = vsel %vm14_vm2, %v717_v29, %v30_v30  ;;  %vm689_vm2 = vcmask 130112  }
  0x54   :  { %718 = vst.msk [vmem:[%s1473_s1 + $0x8] sm:$0xff] %vm16_vm3, %v35_v31  }
  0x78   :  { %v103_v32 = vpop.permute.xlu1 %102  }
  0x7a   :  { %v58_v33 = vpop.permute.xlu0 %57  }
  0x7b   :  { %60 = vst.msk [vmem:[%s1473_s1] sm:$0xff] %vm59_vm4, %v58_v33  }
  0x7c   :  { %105 = vst.msk [vmem:[%s1473_s1] sm:$0xff] %vm104_vm5, %v103_v32  }
  0x7d   :  { %v125_v34 = vpop.permute.xlu1 %124  }
  0x7f   :  { %v80_v35 = vpop.permute.xlu0 %79  }
  0x80   :  { %727 = vst.msk [vmem:[%s1473_s1 + $0x8] sm:$0xff] %vm59_vm4, %v80_v35  }
  0x81   :  { %736 = vst.msk [vmem:[%s1473_s1 + $0x8] sm:$0xff] %vm104_vm5, %v125_v34  }
  0x82   :  { %v170_v36 = vpop.permute.xlu1 %169  }
  0x83   :  { %745 = vst.msk [vmem:[%s1473_s1 + $0x8] sm:$0xff] %vm149_vm6, %v170_v36  }
  0x86   :  { %v148_v37 = vpop.permute.xlu0 %147   ;;  %v215_v38 = vpop.permute.xlu1 %214  }
  0x87   :  { %150 = vst.msk [vmem:[%s1473_s1] sm:$0xff] %vm149_vm6, %v148_v37  }
  0x88   :  { %754 = vst.msk [vmem:[%s1473_s1 + $0x8] sm:$0xff] %vm194_vm7, %v215_v38  }
  0x8a   :  { %v193_v39 = vpop.permute.xlu0 %192  }
  0x8b   :  { %195 = vst.msk [vmem:[%s1473_s1] sm:$0xff] %vm194_vm7, %v193_v39   ;;  %v260_v40 = vpop.permute.xlu1 %259  }
  0x8c   :  { %763 = vst.msk [vmem:[%s1473_s1 + $0x8] sm:$0xff] %vm239_vm8, %v260_v40  }
  0x8f   :  { %v238_v41 = vpop.permute.xlu0 %237  }
  0x90   :  { %240 = vst.msk [vmem:[%s1473_s1] sm:$0xff] %vm239_vm8, %v238_v41   ;;  %v305_v42 = vpop.permute.xlu1 %304  }
  0x91   :  { %772 = vst.msk [vmem:[%s1473_s1 + $0x8] sm:$0xff] %vm284_vm9, %v305_v42  }
  0x94   :  { %v283_v43 = vpop.permute.xlu0 %282  }
  0x95   :  { %285 = vst.msk [vmem:[%s1473_s1] sm:$0xff] %vm284_vm9, %v283_v43   ;;  %v350_v44 = vpop.permute.xlu1 %349  }
  0x96   :  { %781 = vst.msk [vmem:[%s1473_s1 + $0x8] sm:$0xff] %vm329_vm10, %v350_v44  }
  0x99   :  { %v328_v45 = vpop.permute.xlu0 %327  }
  0x9a   :  { %330 = vst.msk [vmem:[%s1473_s1] sm:$0xff] %vm329_vm10, %v328_v45   ;;  %v395_v46 = vpop.permute.xlu1 %394  }
  0x9b   :  { %790 = vst.msk [vmem:[%s1473_s1 + $0x8] sm:$0xff] %vm374_vm11, %v395_v46  }
  0x9e   :  { %v373_v47 = vpop.permute.xlu0 %372  }
  0x9f   :  { %375 = vst.msk [vmem:[%s1473_s1] sm:$0xff] %vm374_vm11, %v373_v47   ;;  %v440_v48 = vpop.permute.xlu1 %439  }
  0xa0   :  { %799 = vst.msk [vmem:[%s1473_s1 + $0x8] sm:$0xff] %vm419_vm12, %v440_v48  }
  0xa3   :  { %v418_v49 = vpop.permute.xlu0 %417  }
  0xa4   :  { %420 = vst.msk [vmem:[%s1473_s1] sm:$0xff] %vm419_vm12, %v418_v49   ;;  %v485_v50 = vpop.permute.xlu1 %484  }
  0xa5   :  { %808 = vst.msk [vmem:[%s1473_s1 + $0x8] sm:$0xff] %vm464_vm13, %v485_v50  }
  0xa8   :  { %v463_v51 = vpop.permute.xlu0 %462  }
  0xa9   :  { %465 = vst.msk [vmem:[%s1473_s1] sm:$0xff] %vm464_vm13, %v463_v51   ;;  %v530_v52 = vpop.permute.xlu1 %529  }
  0xaa   :  { %817 = vst.msk [vmem:[%s1473_s1 + $0x8] sm:$0xff] %vm509_vm14, %v530_v52  }
  0xad   :  { %v508_v53 = vpop.permute.xlu0 %507  }
  0xae   :  { %510 = vst.msk [vmem:[%s1473_s1] sm:$0xff] %vm509_vm14, %v508_v53   ;;  %v575_v54 = vpop.permute.xlu1 %574  }
  0xaf   :  { %826 = vst.msk [vmem:[%s1473_s1 + $0x8] sm:$0xff] %vm554_vm15, %v575_v54  }
  0xb2   :  { %v553_v55 = vpop.permute.xlu0 %552  }
  0xb3   :  { %555 = vst.msk [vmem:[%s1473_s1] sm:$0xff] %vm554_vm15, %v553_v55   ;;  %v620_v56 = vpop.permute.xlu1 %619  }
  0xb4   :  { %835 = vst.msk [vmem:[%s1473_s1 + $0x8] sm:$0xff] %vm599_vm0, %v620_v56  }
  0xb7   :  { %v598_v57 = vpop.permute.xlu0 %597  }
  0xb8   :  { %600 = vst.msk [vmem:[%s1473_s1] sm:$0xff] %vm599_vm0, %v598_v57   ;;  %v665_v58 = vpop.permute.xlu1 %664  }
  0xb9   :  { %844 = vst.msk [vmem:[%s1473_s1 + $0x8] sm:$0xff] %vm644_vm1, %v665_v58  }
  0xbc   :  { %v643_v59 = vpop.permute.xlu0 %642  }
  0xbd   :  { %645 = vst.msk [vmem:[%s1473_s1] sm:$0xff] %vm644_vm1, %v643_v59   ;;  %v710_v60 = vpop.permute.xlu1 %709  }
  0xbe   :  { %853 = vst.msk [vmem:[%s1473_s1 + $0x8] sm:$0xff] %vm689_vm2, %v710_v60  }
  0xc1   :  { %v688_v61 = vpop.permute.xlu0 %687  }
  0xc2   :  { %690 = vst.msk [vmem:[%s1473_s1] sm:$0xff] %vm689_vm2, %v688_v61  }

// kernel: edge_conv2d.3
= control target key start
LH: loop header
LB: loop body
LE: loop exit
PB: predicated region body
PF: predicated region fallthrough
CT: control target
= control target key end

     0   :  { %s302_s12 = smov 0   ;;  %s331_s0 = inlined_call_operand.vmem [shape: f32[8,256], index: 0, kind: input, shape index: {}]   ;;  %s332_s1 = inlined_call_operand.vmem [shape: f32[2,8,1], index: 1, kind: input, shape index: {}]   ;;  %s333_s2 = inlined_call_operand.vmem [shape: f32[2,8,1], index: 2, kind: input, shape index: {}]   ;;  %s334_s3 = inlined_call_operand.vmem [shape: f32[8,256], index: 3, kind: output, shape index: {}]  }
   0x1 LB: > { %s252_s13 = sadd.s32 4294967295, %s279_s12   ;;  %p256_p0 = scmp.ge.s32.totalorder %s279_s12, 1  ;;  %s279_s12 = sphi %s302_s12, %s13_s12  }
   0x2   : > { %p136_p1 = scmp.lt.s32.totalorder %s279_s12, 3 }
   0x4   : > { %p137_p2 = pnand %p256_p0, %p136_p1 }
   0x5   : > { %v166_v0 = vld [vmem:[%s332_s1] sm:$0xff] (!%p137_p2)  ;;  %v167_v1 = vld [vmem:[%s332_s1 + $0x8] sm:$0xff] (!%p137_p2)  ;;  %vm168_vm0 = vcmask (!%p137_p2), 7168   ;;  %v281_v3 = vmov (!%p137_p2), 0   ;;  %p158_p3 = scmp.lt.s32.totalorder (!%p137_p2), %s252_s13, 1 }
   0x6   : > { %140 = sbr.rel (%p137_p2) target bundleno = 163 (0xa3), region = 32  ;;  %v172_v2 = vld [vmem:[%s333_s2] sm:$0xff] (!%p137_p2)  ;;  %270 = vset.pattern.permute.xlu0 (!%p137_p2), %v281_v3  ;;  %v169_v4 = vsel (!%p137_p2), %vm168_vm0, %v166_v0, 0.0  ;;  %v170_v5 = vsel (!%p137_p2), %vm168_vm0, %v167_v1, 0.0  ;;  %v173_v6 = vld [vmem:[%s333_s2 + $0x8] sm:$0xff] (!%p137_p2) }
   0x7   : > { %v174_v7 = vsel (!%p137_p2), %vm168_vm0, %v172_v2, 0.0  ;;  %v171_v8 = vadd.f32 (!%p137_p2), %v170_v5, %v169_v4  ;;  %v175_v9 = vsel (!%p137_p2), %vm168_vm0, %v173_v6, 0.0 }
   0x8   : > { %v176_v10 = vadd.f32 (!%p137_p2), %v175_v9, %v174_v7 }
   0x9   : > { %v177_v11 = vmul.f32 (!%p137_p2), 0.00048828125, %v171_v8 }
   0xa   : > { %v178_v12 = vmul.f32 (!%p137_p2), 0.00048828125, %v176_v10 }
   0xb   : > { %187 = vperm.xlu0 (!%p137_p2), %270, %v177_v11   ;;  %v179_v13 = vmul.f32 (!%p137_p2), %v177_v11, %v177_v11 }
   0xd   : > { %v180_v14 = vsub.f32 %v178_v12, %v179_v13  ;;  %s336_s13 = smov (!%p158_p3, %s252_s13), 1 }
   0xe   : > { %s257_s22 = sshll.u32 %s336_s13, 3 }
   0xf   : > { %v181_v15 = vmax.f32 %v180_v14, 0.0  ;;  %s161_s25 = scalar_lea.vmem %s331_s0, %s257_s22  ;;  %s165_s28 = scalar_lea.vmem %s334_s3, %s257_s22 }
  0x10   : > { %v184_v19 = vld [vmem:[%s161_s25] sm:$0xff] }
  0x11   : > { %v182_v16 = vadd.f32 1e-05, %v181_v15 }
  0x13   : > { %271 = vrsqrt.f32 %v182_v16 }
  0x1d   : > { %v272_v17 = vpop.eup %271 }
  0x1e   : > { %193 = vperm.xlu0 %270, %v272_v17  }
  0x8a   : > { %v188_v18 = vpop.permute.xlu0 %187 }
  0x8b   : > { %v190_v20 = vsub.f32 %v184_v19, %v188_v18 }
  0x9d   : > { %v194_v21 = vpop.permute.xlu0 %193 }
  0x9e   : > { %v196_v22 = vmul.f32 %v194_v21, %v190_v20 }
  0xa0   : > { %v197_v23 = vmax.f32 %v196_v22, 0.0 }
  0xa2   : > { %198 = vst [vmem:[%s165_s28] sm:$0xff] %v197_v23 }
  0xa3 PF: > { %s13_s12 = sadd.s32 1, %s279_s12  }
  0xa4   : > { %p10_p4 = scmp.ge.s32.totalorder %s13_s12, 4  }
  0xa6   :  { %12 = sbr.rel (!%p10_p4) target bundleno = 1 (0x1), region = 62 }

// kernel: edge_conv2d.2
= control target key start
LH: loop header
LB: loop body
LE: loop exit
PB: predicated region body
PF: predicated region fallthrough
CT: control target
= control target key end

     0   :  { %s1206_s15 = smov 0   ;;  %s1208_s16 = smov 0   ;;  %s1290_s0 = inlined_call_operand.vmem [shape: f32[8,8,256], index: 0, kind: input, shape index: {}]   ;;  %s1291_s1 = inlined_call_operand.vmem [shape: f32[8,8], index: 1, kind: input, shape index: {}]   ;;  %s1292_s2 = inlined_call_operand.vmem [shape: f32[8,256], index: 2, kind: output, shape index: {0}]   ;;  %s1293_s3 = inlined_call_operand.vmem [shape: f32[2,8,1], index: 3, kind: output, shape index: {1}]   ;;  %s1294_s4 = inlined_call_operand.vmem [shape: f32[2,8,1], index: 4, kind: output, shape index: {2}]  }
   0x1   :  { %s1210_s17 = smov 0  }
   0x2 LB: > { %s1045_s18 = sadd.s32 4294967295, %s1177_s17   ;;  %s1223_s19 = sadd.s32 1, %s1177_s17   ;;  %s1177_s17 = sphi %s1210_s17, %s1297_s17   ;;  %s1173_s16 = sphi %s1208_s16, %s1296_s16   ;;  %s1169_s15 = sphi %s1206_s15, %s1295_s15  }
   0x3   : > { %s19_s20 = ssub.s32 %s1177_s17, %s1223_s19  ;;  %s22_s21 = sadd.s32 1, %s1173_s16 }
   0x4   : > { %p20_p0 = scmp.eq.s32.totalorder %s19_s20, 0  ;;  %p29_p1 = scmp.ne.s32.totalorder %s1173_s16, %s1169_s15 }
   0x5   : > { %p30_p2 = scmp.eq.s32.totalorder %s1177_s17, 0  ;;  %p1048_p4 = scmp.ge.s32.totalorder %s1177_s17, 2 }
   0x6   : > { %s1232_s22 = scalar_select %p20_p0, %s1173_s16, %s22_s21  }
   0x7   : > { %p31_p3 = por %p30_p2, %p29_p1  ;;  %157 = sbr.rel (%p1048_p4) target bundleno = 22 (0x16), region = 20 }
   0xe   : > { %160 = sbr.rel (!%p31_p3) target bundleno = 22 (0x16), region = 24  ;;  %s162_s23 = sand.u32 (%p31_p3), 1, %s1173_s16  }
   0xf   : > { %s1050_s24 = sshll.u32 (%p31_p3), %s1177_s17, 3  ;;  %s1049_s25 = sshll.u32 (%p31_p3), %s162_s23, 6 }
  0x10   : > { %s166_s28 = scalar_lea.vmem (%p31_p3), %s1290_s0, %s1050_s24  ;;  %s164_s29 = scalar_lea.vmem (%p31_p3), [#allocation2], %s1049_s25 }
  0x11   : > { %v208_v0 = vld [vmem:[%s166_s28] sm:$0xff] (%p31_p3)  ;;  %v210_v1 = vld [vmem:[%s166_s28 + $0x10] sm:$0xff] (%p31_p3) }
  0x12   : > { %v212_v2 = vld [vmem:[%s166_s28 + $0x20] sm:$0xff] (%p31_p3)  ;;  %209 = vst [vmem:[%s164_s29] sm:$0xff] (%p31_p3), %v208_v0  ;;  %211 = vst [vmem:[%s164_s29 + $0x8] sm:$0xff] (%p31_p3), %v210_v1  ;;  %v214_v3 = vld [vmem:[%s166_s28 + $0x30] sm:$0xff] (%p31_p3) }
  0x13   : > { %213 = vst [vmem:[%s164_s29 + $0x10] sm:$0xff] (%p31_p3), %v212_v2  ;;  %v216_v4 = vld [vmem:[%s166_s28 + $0x40] sm:$0xff] (%p31_p3)  ;;  %v218_v5 = vld [vmem:[%s166_s28 + $0x50] sm:$0xff] (%p31_p3)  ;;  %215 = vst [vmem:[%s164_s29 + $0x18] sm:$0xff] (%p31_p3), %v214_v3 }
  0x14   : > { %217 = vst [vmem:[%s164_s29 + $0x20] sm:$0xff] (%p31_p3), %v216_v4  ;;  %219 = vst [vmem:[%s164_s29 + $0x28] sm:$0xff] (%p31_p3), %v218_v5  ;;  %v220_v6 = vld [vmem:[%s166_s28 + $0x60] sm:$0xff] (%p31_p3)  ;;  %v222_v7 = vld [vmem:[%s166_s28 + $0x70] sm:$0xff] (%p31_p3) }
  0x15   : > { %221 = vst [vmem:[%s164_s29 + $0x30] sm:$0xff] %v220_v6  ;;  %223 = vst [vmem:[%s164_s29 + $0x38] sm:$0xff] %v222_v7 }
  0x16 PF: > { %p1051_p5 = scmp.ge.s32.totalorder %s1177_s17, 1  ;;  %p228_p6 = scmp.lt.s32.totalorder %s1177_s17, 3 }
  0x18   : > { %p229_p7 = pnand %p1051_p5, %p228_p6 }
  0x19   : > { %s235_s30 = sand.u32 (!%p229_p7), 1, %s1169_s15   ;;  %v1179_v8 = vmov (!%p229_p7), 0.0   ;;  %vm1180_vm0 = vmmov (!%p229_p7), 0   ;;  %v279_v9 = vld [vmem:[%s1291_s1] sm:$0xff] (!%p229_p7)  ;;  %vm281_vm1 = vcmask (!%p229_p7), 64512   ;;  %p267_p8 = scmp.lt.s32.totalorder (!%p229_p7), %s1045_s18, 1 }
  0x1a   : > { %232 = sbr.rel (%p229_p7) target bundleno = 415 (0x19f), region = 62  ;;  %1089 = vmatprep.subr.mxu0 (!%p229_p7), %v1179_v8  ;;  %1094 = vmatprep.subr.mxu1 (!%p229_p7), %v1179_v8  ;;  %s1052_s5 = sshll.u32 (!%p229_p7), %s235_s30, 6  ;;  %vm921_vm2 = vcmask (!%p229_p7), 7168  }
  0x1b   : > { %1091 = vmatprep.mubr.msk.f32.mxu0 (!%p229_p7), %vm1180_vm0, %v1179_v8  ;;  %1096 = vmatprep.mubr.msk.f32.mxu1 (!%p229_p7), %vm1180_vm0, %v1179_v8  ;;  %s237_s8 = scalar_lea.vmem (!%p229_p7), [#allocation2], %s1052_s5 }
  0x1c   : > { %v280_v10 = vld [vmem:[%s237_s8] sm:$0xff] (!%p229_p7)  ;;  %v1057_v11 = vld [vmem:[%s237_s8 + $0x8] sm:$0xff] (!%p229_p7)  ;;  %v1059_v12 = vld [vmem:[%s237_s8 + $0x10] sm:$0xff] (!%p229_p7) }
  0x1d   : > { %1090 = vmatpush3.msra.mxu0 (!%p229_p7), %v280_v10  ;;  %1095 = vmatpush3.msra.mxu1 (!%p229_p7), %v1057_v11  ;;  %v1061_v13 = vld [vmem:[%s237_s8 + $0x18] sm:$0xff] (!%p229_p7)  ;;  %v1063_v14 = vld [vmem:[%s237_s8 + $0x20] sm:$0xff] (!%p229_p7)  ;;  %v1065_v15 = vld [vmem:[%s237_s8 + $0x28] sm:$0xff] (!%p229_p7) }
  0x1e   : > { %1092 = vmatmul.mubr.msk.f32.vlgmr.msra.gmra.mrb[0].mxu0 (!%p229_p7), %vm281_vm1, %v279_v9  ;;  %1097 = vmatmul.mubr.msk.f32.vlgmr.msra.gmra.mrb[0].mxu1 (!%p229_p7), %vm281_vm1, %v279_v9  ;;  %v1067_v16 = vld [vmem:[%s237_s8 + $0x30] sm:$0xff] (!%p229_p7)  ;;  %v1069_v17 = vld [vmem:[%s237_s8 + $0x38] sm:$0xff] (!%p229_p7) }
  0x1f   : > { %1099 = vmatprep.subr.mxu0 (!%p229_p7), %v1179_v8  ;;  %1101 = vmatprep.mubr.msk.f32.mxu0 (!%p229_p7), %vm1180_vm0, %v1179_v8 }
  0x20   : > { %1100 = vmatpush3.msra.mxu0 (!%p229_p7), %v1059_v12  ;;  %1104 = vmatprep.subr.mxu1 (!%p229_p7), %v1179_v8 }
  0x21   : > { %1105 = vmatpush3.msra.mxu1 %v1061_v13  ;;  %1106 = vmatprep.mubr.msk.f32.mxu1 %vm1180_vm0, %v1179_v8  ;;  %s1299_s18 = smov (!%p267_p8, %s1045_s18), 1 }
  0x22   : > { %1102 = vmatmul.mubr.msk.f32.vlgmr.msra.gmra.mrb[2].mxu0 %vm281_vm1, %v279_v9  ;;  %1107 = vmatmul.mubr.msk.f32.vlgmr.msra.gmra.mrb[2].mxu1 %vm281_vm1, %v279_v9  ;;  %s1266_s9 = sshll.u32 %s1299_s18, 3 }
  0x23   : > { %1109 = vmatprep.subr.mxu0 %v1179_v8  ;;  %1111 = vmatprep.mubr.msk.f32.mxu0 %vm1180_vm0, %v1179_v8  ;;  %s270_s12 = scalar_lea.vmem %s1292_s2, %s1266_s9  ;;  %s274_s15 = scalar_lea.vmem %s1293_s3, %s1266_s9 }
  0x24   : > { %1110 = vmatpush3.msra.mxu0 %v1063_v14  ;;  %1114 = vmatprep.subr.mxu1 %v1179_v8  ;;  %s278_s20 = scalar_lea.vmem %s1294_s4, %s1266_s9 }
  0x25   : > { %1115 = vmatpush3.msra.mxu1 %v1065_v15  ;;  %1116 = vmatprep.mubr.msk.f32.mxu1 %vm1180_vm0, %v1179_v8 }
  0x26   : > { %1112 = vmatmul.mubr.msk.f32.vlgmr.msra.gmra.mrb[4].mxu0 %vm281_vm1, %v279_v9  ;;  %1117 = vmatmul.mubr.msk.f32.vlgmr.msra.gmra.mrb[4].mxu1 %vm281_vm1, %v279_v9 }
  0x27   : > { %1119 = vmatprep.subr.mxu0 %v1179_v8  ;;  %1121 = vmatprep.mubr.msk.f32.mxu0 %vm1180_vm0, %v1179_v8 }
  0x28   : > { %1120 = vmatpush3.msra.mxu0 %v1067_v16  ;;  %1124 = vmatprep.subr.mxu1 %v1179_v8 }
  0x29   : > { %1125 = vmatpush3.msra.mxu1 %v1069_v17  ;;  %1126 = vmatprep.mubr.msk.f32.mxu1 %vm1180_vm0, %v1179_v8 }
  0x2a   : > { %1122 = vmatmul.mubr.msk.f32.vlgmr.msra.gmra.mrb[6].mxu0 %vm281_vm1, %v279_v9  ;;  %1127 = vmatmul.mubr.msk.f32.vlgmr.msra.gmra.mrb[6].mxu1 %vm281_vm1, %v279_v9 }
  0xf1   : > { %v351_v18 = vpop.f32.mrb[0].mxu0  ;;  %v428_v19 = vpop.f32.mrb[0].mxu1 }
  0xf2   : > { %v432_v20 = vmax.f32 %v351_v18, %v428_v19  ;;  %433 = vadd.xlane.f32.xlu1 %v428_v19  ;;  %v1098_v21 = vpop.f32.mrb[1].mxu1  ;;  %355 = vadd.xlane.f32.xlu0 %v351_v18  ;;  %v1093_v22 = vpop.f32.mrb[1].mxu0  ;;  %v436_v23 = vmul.f32 %v428_v19, %v428_v19  ;;  %v357_v24 = vmul.f32 %v351_v18, %v351_v18 }
  0xf5   : > { %v508_v25 = vpop.f32.mrb[2].mxu0  ;;  %v588_v26 = vpop.f32.mrb[2].mxu1 }
  0xf6   : > { %v512_v27 = vmax.f32 %v432_v20, %v508_v25  ;;  %437 = vadd.xlane.f32.xlu1 %v436_v23  ;;  %358 = vadd.xlane.f32.xlu0 %v357_v24  ;;  %v1103_v28 = vpop.f32.mrb[3].mxu0  ;;  %v1108_v29 = vpop.f32.mrb[3].mxu1  ;;  %v516_v30 = vmul.f32 %v508_v25, %v508_v25  ;;  %v596_v37 = vmul.f32 %v588_v26, %v588_v26 }
  0xf8   : > { %v592_v31 = vmax.f32 %v512_v27, %v588_v26 }
  0xf9   : > { %v668_v32 = vpop.f32.mrb[4].mxu0  ;;  %v748_v33 = vpop.f32.mrb[4].mxu1 }
  0xfa   : > { %v672_v34 = vmax.f32 %v592_v31, %v668_v32  ;;  %513 = vadd.xlane.f32.xlu0 %v508_v25  ;;  %517 = vadd.xlane.f32.xlu1 %v516_v30  ;;  %v1113_v35 = vpop.f32.mrb[5].mxu0  ;;  %v1118_v36 = vpop.f32.mrb[5].mxu1  ;;  %v676_v42 = vmul.f32 %v668_v32, %v668_v32  ;;  %v756_v46 = vmul.f32 %v748_v33, %v748_v33 }
  0xfc   : > { %v752_v38 = vmax.f32 %v672_v34, %v748_v33 }
  0xfd   : > { %v828_v39 = vpop.f32.mrb[6].mxu0  ;;  %v908_v40 = vpop.f32.mrb[6].mxu1 }
  0xfe   : > { %v832_v41 = vmax.f32 %v752_v38, %v828_v39  ;;  %593 = vadd.xlane.f32.xlu0 %v588_v26  ;;  %597 = vadd.xlane.f32.xlu1 %v596_v37  ;;  %v1123_v43 = vpop.f32.mrb[7].mxu0  ;;  %v1128_v44 = vpop.f32.mrb[7].mxu1  ;;  %v836_v47 = vmul.f32 %v828_v39, %v828_v39  ;;  %v916_v48 = vmul.f32 %v908_v40, %v908_v40 }
 0x100   : > { %v912_v45 = vmax.f32 %v832_v41, %v908_v40 }
 0x102   : > { %920 = vst [vmem:[%s270_s12] sm:$0xff] %v912_v45  ;;  %673 = vadd.xlane.f32.xlu0 %v668_v32  ;;  %677 = vadd.xlane.f32.xlu1 %v676_v42 }
 0x106   : > { %753 = vadd.xlane.f32.xlu0 %v748_v33  ;;  %757 = vadd.xlane.f32.xlu1 %v756_v46 }
 0x10a   : > { %833 = vadd.xlane.f32.xlu0 %v828_v39  ;;  %837 = vadd.xlane.f32.xlu1 %v836_v47 }
 0x10e   : > { %913 = vadd.xlane.f32.xlu0 %v908_v40  ;;  %917 = vadd.xlane.f32.xlu1 %v916_v48 }
 0x17f   : > { %v434_v49 = vpop.xlane.xlu1 %433  ;;  %v356_v50 = vpop.xlane.xlu0 %355 }
 0x180   : > { %v435_v59 = vadd.f32 %v434_v49, %v356_v50 }
 0x183   : > { %v438_v51 = vpop.xlane.xlu1 %437  ;;  %v359_v52 = vpop.xlane.xlu0 %358 }
 0x184   : > { %v439_v60 = vadd.f32 %v438_v51, %v359_v52 }
 0x187   : > { %v514_v53 = vpop.xlane.xlu0 %513  ;;  %v518_v54 = vpop.xlane.xlu1 %517 }
 0x188   : > { %v515_v61 = vadd.f32 %v514_v53, %v435_v59  ;;  %v519_v62 = vadd.f32 %v518_v54, %v439_v60 }
 0x18b   : > { %v594_v55 = vpop.xlane.xlu0 %593  ;;  %v598_v56 = vpop.xlane.xlu1 %597 }
 0x18c   : > { %v595_v1 = vadd.f32 %v594_v55, %v515_v61  ;;  %v599_v2 = vadd.f32 %v598_v56, %v519_v62 }
 0x18f   : > { %v674_v57 = vpop.xlane.xlu0 %673  ;;  %v678_v58 = vpop.xlane.xlu1 %677 }
 0x190   : > { %v675_v3 = vadd.f32 %v674_v57, %v595_v1  ;;  %v679_v4 = vadd.f32 %v678_v58, %v599_v2 }
 0x193   : > { %v754_v63 = vpop.xlane.xlu0 %753  ;;  %v758_v0 = vpop.xlane.xlu1 %757 }
 0x194   : > { %v755_v7 = vadd.f32 %v754_v63, %v675_v3  ;;  %v759_v8 = vadd.f32 %v758_v0, %v679_v4 }
 0x197   : > { %v834_v5 = vpop.xlane.xlu0 %833  ;;  %v838_v6 = vpop.xlane.xlu1 %837 }
 0x198   : > { %v835_v9 = vadd.f32 %v834_v5, %v755_v7  ;;  %v839_v10 = vadd.f32 %v838_v6, %v759_v8 }
 0x19b   : > { %v914_v11 = vpop.xlane.xlu0 %913  ;;  %v918_v12 = vpop.xlane.xlu1 %917 }
 0x19c   : > { %v915_v13 = vadd.f32 %v914_v11, %v835_v9  ;;  %v919_v14 = vadd.f32 %v918_v12, %v839_v10 }
 0x19e   : > { %922 = vst.msk [vmem:[%s274_s15] sm:$0xff] %vm921_vm2, %v915_v13  ;;  %923 = vst.msk [vmem:[%s278_s20] sm:$0xff] %vm921_vm2, %v919_v14 }
 0x19f PF: > { %p12_p9 = scmp.ge.s32.totalorder %s1223_s19, 4   ;;  %s1295_s15 = smov %s1173_s16 }
 0x1a0   : > { %s1296_s16 = smov %s1232_s22  ;;  %s1297_s17 = smov %s1223_s19 }
 0x1a1   :  { %14 = sbr.rel (!%p12_p9) target bundleno = 2 (0x2), region = 132 }

</bundles_post_ra>
